<compile_context>
chip_gen: v6e
topology: v6e:2x2x1
jax: 0.10.0
libtpu: 0.0.40
codegen_flags: <defaults>
</compile_context>

<pallas_src>
import functools

import jax
import jax.numpy as jnp
from jax import lax
from jax.experimental import pallas as pl
from jax.experimental.pallas import tpu as pltpu

_EPS = 1e-8  # F.cosine_similarity default eps


def _round_up(x, m):
    return (x + m - 1) // m * m


def _center_loss_kernel(center_ref, feat_ref, out_ref, *, n_rows, row_tile):
    # center_ref : (1, D)  VMEM f32, pre-normalized (same block every step)
    # feat_ref   : (TN, D) VMEM row tile of feat
    # out_ref    : (1, 1)  SMEM f32 running sum of per-row cos
    t = pl.program_id(0)

    @pl.when(t == 0)
    def _init():
        out_ref[0, 0] = jnp.float32(0.0)

    feat = feat_ref[...].astype(jnp.float32)                    # (TN, D)
    c = center_ref[...]                                          # (1, D) f32

    # Fused VPU multiplies + XLU lane reduces (HBM-bound kernel; MXU skipped).
    dot = jnp.sum(feat * c, axis=-1, keepdims=True)              # (TN, 1)
    feat_sq = jnp.sum(feat * feat, axis=-1, keepdims=True)       # (TN, 1)
    # EUP rsqrt; eps clamp on the squared norm == max(||f||, eps) per row.
    inv_feat = lax.rsqrt(jnp.maximum(feat_sq, jnp.float32(_EPS * _EPS)))
    cos = dot * inv_feat                                          # (TN, 1)

    if n_rows % row_tile != 0:
        # Ragged tail: rows >= n_rows in the last block hold unspecified data
        # (rsqrt of garbage may be Inf/NaN) -> zero them BEFORE the reduce.
        row_ids = t * row_tile + lax.broadcasted_iota(jnp.int32, cos.shape, 0)
        cos = jnp.where(row_ids < n_rows, cos, jnp.float32(0.0))

    out_ref[0, 0] += jnp.sum(cos)


def _center_loss_jnp(feat, centers, loss_weight):
    """Pure-jnp reference / tiny-input fallback (same math as the kernel)."""
    f = feat.astype(jnp.float32)
    c = centers.astype(jnp.float32)[None, :, :]
    dot = jnp.sum(f * c, axis=-1)
    fn = jnp.sqrt(jnp.sum(f * f, axis=-1))
    cn = jnp.sqrt(jnp.sum(c * c, axis=-1))
    cos = dot / (jnp.maximum(fn, _EPS) * jnp.maximum(cn, _EPS)) + 1e-6
    n = feat.shape[0] * feat.shape[1]
    return jnp.float32(loss_weight) * (jnp.sum(cos) - jnp.float32(n))


def center_loss(feat, centers, loss_weight=1.0, *, block_rows=None,
                use_pallas=None):
    """feat: (B, M, D); centers: (1, D).  Returns the scalar CenterLoss."""
    B, M, D = feat.shape
    if centers.ndim != 2 or centers.shape[1] != D:
        raise ValueError(
            "Center's dim: {0} should be equal to input feature's dim: {1}"
            .format(centers.shape[-1], D))
    if centers.shape[0] != 1:
        raise ValueError("num_classes must be 1, got {}".format(centers.shape[0]))

    n = B * M
    itemsize = jnp.dtype(feat.dtype).itemsize
    if use_pallas is None:
        # Below ~1 MiB of feat the fixed launch/per-step overhead dominates;
        # a fused XLA expression is at least as fast.
        use_pallas = n * D * itemsize >= (1 << 20)
    if not use_pallas:
        return _center_loss_jnp(feat, centers, loss_weight)

    feat2d = feat.reshape(n, D)

    if block_rows is None:
        # Target ~4 MiB input blocks (8 MiB double-buffered): comfortably
        # within the 32 MiB scoped-VMEM default on v5e/v6e/v7x and large
        # enough that the ~0.35 us per-step overhead is amortized.
        target_block_bytes = 4 << 20
        block_rows = max(8, (target_block_bytes // (D * itemsize)) // 8 * 8)
    tn = _round_up(min(block_rows, _round_up(n, 8)), 8)
    tiles = pl.cdiv(n, tn)

    # Pre-normalize the (tiny) center row once: matches F.cosine_similarity's
    # per-norm eps clamp and removes all per-tile center work from the kernel.
    c32 = centers.astype(jnp.float32).reshape(1, D)
    c_norm = jnp.sqrt(jnp.sum(c32 * c32))
    c_row = c32 / jnp.maximum(c_norm, jnp.float32(_EPS))

    kernel = functools.partial(_center_loss_kernel, n_rows=n, row_tile=tn)

    cos_sum = pl.pallas_call(
        kernel,
        out_shape=jax.ShapeDtypeStruct((1, 1), jnp.float32),
        grid_spec=pltpu.PrefetchScalarGridSpec(
            num_scalar_prefetch=0,
            grid=(tiles,),
            in_specs=[
                pl.BlockSpec((1, D), lambda t: (0, 0)),     # resident center
                pl.BlockSpec((tn, D), lambda t: (t, 0)),    # streamed feat rows
            ],
            out_specs=pl.BlockSpec((1, 1), lambda t: (0, 0),
                                   memory_space=pltpu.MemorySpace.SMEM),
        ),
        compiler_params=pltpu.CompilerParams(
            dimension_semantics=("arbitrary",)),
        cost_estimate=pl.CostEstimate(
            flops=4 * n * D,
            transcendentals=n,
            bytes_accessed=n * D * itemsize + D * 4 + 4),
    )(c_row, feat2d)

    total = cos_sum[0, 0]
    # sum(cos + 1e-6) over the n real rows == sum(cos) + 1e-6 * n.
    return jnp.float32(loss_weight) * (total + jnp.float32(1e-6) * n
                                       - jnp.float32(n))


if __name__ == "__main__":
    num_classes, feat_dim, loss_weight = 1, 256, 1.0

    key = jax.random.PRNGKey(0)
    k_feat, k_cent, k_feat2 = jax.random.split(key, 3)
    # Mirrors torch.rand(num_classes, feat_dim)
    centers = jax.random.uniform(k_cent, (num_classes, feat_dim),
                                 dtype=jnp.float32)

    # Module-docstring shape: 2 speakers x 6 utterances x 256 dims.  Forces
    # the Pallas path (single partial block: 12 real rows in a 16-row tile).
    feat_small = jax.random.normal(k_feat, (2, 6, feat_dim), dtype=jnp.float32)
    loss_small = center_loss(feat_small, centers, loss_weight, use_pallas=True)
    jax.block_until_ready(loss_small)
    ref_small = _center_loss_jnp(feat_small, centers, loss_weight)
    assert jnp.allclose(loss_small, ref_small, atol=1e-3, rtol=1e-4), (
        loss_small, ref_small)

    # Multi-tile + ragged tail: n = 4*300 = 1200 rows, block_rows=512 -> grid
    # of 3 tiles with a 176-row partial last tile (exercises the in-kernel
    # row mask and the streaming accumulation).
    feat_big = jax.random.normal(k_feat2, (4, 300, feat_dim), dtype=jnp.float32)
    loss_big = center_loss(feat_big, centers, loss_weight, block_rows=512)
    jax.block_until_ready(loss_big)
    ref_big = _center_loss_jnp(feat_big, centers, loss_weight)
    assert jnp.allclose(loss_big, ref_big, atol=1e-2, rtol=1e-4), (
        loss_big, ref_big)

    print("KERNEL_OK")
</pallas_src>

<mosaic_0001>
module attributes {stable_mosaic.version = 11 : i64} {
  func.func @_center_loss_kernel(%arg0: i32, %arg1: memref<1x256xf32, #tpu.memory_space<vmem>>, %arg2: memref<16x256xf32, #tpu.memory_space<vmem>>, %arg3: memref<1x1xf32, #tpu.memory_space<smem>>) attributes {dimension_semantics = [#tpu.dimension_semantics<arbitrary>], iteration_bounds = array<i64: 1>, scalar_prefetch = 0 : i64, scratch_operands = 0 : i64, tpu.core_type = #tpu.core_type<tc>, window_params = [{pipeline_mode = #tpu.pipeline_mode<synchronous>, transform_indices = @transform_0, window_bounds = array<i64: 1, 256>}, {transform_indices = @transform_1, window_bounds = array<i64: 16, 256>}, {transform_indices = @transform_2, window_bounds = array<i64: 1, 1>}]} {
    %c0_i32 = arith.constant 0 : i32
    %0 = arith.cmpi eq, %arg0, %c0_i32 : i32
    %1 = arith.extui %0 : i1 to i32
    %c0_i32_0 = arith.constant 0 : i32
    %2 = arith.cmpi ne, %1, %c0_i32_0 : i32
    scf.if %2 {
      %cst_12 = arith.constant 0.000000e+00 : f32
      %c0_13 = arith.constant 0 : index
      %c0_14 = arith.constant 0 : index
      %31 = memref.load %arg3[%c0_13, %c0_14] : memref<1x1xf32, #tpu.memory_space<smem>>
      memref.store %cst_12, %arg3[%c0_13, %c0_14] : memref<1x1xf32, #tpu.memory_space<smem>>
    } else {
    }
    %c0 = arith.constant 0 : index
    %c0_1 = arith.constant 0 : index
    %3 = vector.load %arg2[%c0, %c0_1] : memref<16x256xf32, #tpu.memory_space<vmem>>, vector<16x256xf32>
    %c0_2 = arith.constant 0 : index
    %c0_3 = arith.constant 0 : index
    %4 = vector.load %arg1[%c0_2, %c0_3] : memref<1x256xf32, #tpu.memory_space<vmem>>, vector<1x256xf32>
    %5 = vector.broadcast %4 : vector<1x256xf32> to vector<16x256xf32>
    %6 = arith.mulf %3, %5 : vector<16x256xf32>
    %cst = arith.constant dense<0.000000e+00> : vector<16xf32>
    %7 = vector.multi_reduction <add>, %6, %cst [1] : vector<16x256xf32> to vector<16xf32>
    %8 = vector.shape_cast %7 : vector<16xf32> to vector<16x1xf32>
    %9 = arith.mulf %3, %3 : vector<16x256xf32>
    %cst_4 = arith.constant dense<0.000000e+00> : vector<16xf32>
    %10 = vector.multi_reduction <add>, %9, %cst_4 [1] : vector<16x256xf32> to vector<16xf32>
    %11 = vector.shape_cast %10 : vector<16xf32> to vector<16x1xf32>
    %cst_5 = arith.constant 1.000000e-16 : f32
    %12 = vector.broadcast %cst_5 : f32 to vector<16x1xf32>
    %13 = arith.maximumf %11, %12 : vector<16x1xf32>
    %14 = math.rsqrt %13 : vector<16x1xf32>
    %15 = arith.mulf %8, %14 : vector<16x1xf32>
    %c16_i32 = arith.constant 16 : i32
    %16 = arith.muli %arg0, %c16_i32 : i32
    %17 = tpu.iota {dimensions = array<i32: 0>} : vector<16x1xi32>
    %18 = vector.broadcast %16 : i32 to vector<16x1xi32>
    %19 = arith.addi %18, %17 : vector<16x1xi32>
    %c12_i32 = arith.constant 12 : i32
    %20 = vector.broadcast %c12_i32 : i32 to vector<16x1xi32>
    %21 = arith.cmpi slt, %19, %20 : vector<16x1xi32>
    %cst_6 = arith.constant 0.000000e+00 : f32
    %22 = vector.broadcast %cst_6 : f32 to vector<16x1xf32>
    %23 = arith.select %21, %15, %22 : vector<16x1xi1>, vector<16x1xf32>
    %c0_7 = arith.constant 0 : index
    %c0_8 = arith.constant 0 : index
    %24 = memref.load %arg3[%c0_7, %c0_8] : memref<1x1xf32, #tpu.memory_space<smem>>
    %25 = vector.shape_cast %23 : vector<16x1xf32> to vector<1x16x1xf32>
    %cst_9 = arith.constant dense<0.000000e+00> : vector<1xf32>
    %26 = vector.multi_reduction <add>, %25, %cst_9 [1, 2] : vector<1x16x1xf32> to vector<1xf32>
    %27 = vector.shape_cast %26 : vector<1xf32> to vector<1x1x1xf32>
    %28 = vector.extract %27[0, 0, 0] : f32 from vector<1x1x1xf32>
    %29 = arith.addf %24, %28 : f32
    %c0_10 = arith.constant 0 : index
    %c0_11 = arith.constant 0 : index
    %30 = memref.load %arg3[%c0_10, %c0_11] : memref<1x1xf32, #tpu.memory_space<smem>>
    memref.store %29, %arg3[%c0_10, %c0_11] : memref<1x1xf32, #tpu.memory_space<smem>>
    return
  }
  func.func @transform_0(%arg0: i32) -> (i32, i32) {
    %c0_i32 = arith.constant 0 : i32
    %c0_i32_0 = arith.constant 0 : i32
    %c0_i32_1 = arith.constant 0 : i32
    return %c0_i32, %c0_i32_0 : i32, i32
  }
  func.func @transform_1(%arg0: i32) -> (i32, i32) {
    %c0_i32 = arith.constant 0 : i32
    %c0_i32_0 = arith.constant 0 : i32
    return %arg0, %c0_i32 : i32, i32
  }
  func.func @transform_2(%arg0: i32) -> (i32, i32) {
    %c0_i32 = arith.constant 0 : i32
    %c0_i32_0 = arith.constant 0 : i32
    %c0_i32_1 = arith.constant 0 : i32
    return %c0_i32, %c0_i32_0 : i32, i32
  }
}

</mosaic_0001>

<bundles_post_ra>
// kernel: tpu_custom_call.1
= control target key start
LH: loop header
LB: loop body
LE: loop exit
PB: predicated region body
PF: predicated region fallthrough
CT: control target
= control target key end

     0   :  { %7 = vsyncpa [#allocation3], 0  ;;  %s224_s0 = inlined_call_operand.hbm [shape: f32[1,256], index: 0, kind: input, shape index: {}]   ;;  %s225_s1 = inlined_call_operand.hbm [shape: f32[12,256], index: 1, kind: input, shape index: {}]   ;;  %s226_s2 = inlined_call_operand.hbm [shape: f32[1,1], index: 2, kind: output, shape index: {}]  }
   0x1   :  { %8 = vsyncpa [#allocation6], 0 }
   0x2   :  { %9 = vsyncpa [#allocation4], 0  ;;  %s195_s9 = smov [#allocation2]   ;;  %s196_s11 = smov [#allocation5]  }
   0x3   :  { %s16_s10 = sshll.u32 %s195_s9, 4  ;;  %s25_s12 = sshll.u32 %s196_s11, 4  ;;  %s17_s10 = int_to_ptr.vmem [resolvable:$true] %s16_s10  ;;  %s26_s12 = int_to_ptr.vmem [resolvable:$true] %s25_s12 }
   0x4   :  { %s149_s13 = scalar_lea.vmem %s17_s10, 32  ;;  %p154_p1 = scmp.lt.s32.totalorder %s17_s10, %s17_s10 }
   0x5   :  { %p150_p0 = scmp.ne.s32.totalorder %s17_s10, %s149_s13  ;;  %p155_p2 = scmp.lt.s32.totalorder %s149_s13, %s149_s13 }
   0x7   :  { %p156_p3 = por %p155_p2, %p154_p1 }
   0x9   :  { %p157_p4 = pnand %p156_p3, %p150_p0 }
   0xb   :  { %160 = shalt.err (!%p157_p4)
}
   0xc   :  { %19 = dma.hbm_to_vmem [thread:$0]  %s224_s0, 32, %s17_s10, [#allocation3]  }
   0xd   :  { %s169_s16 = scalar_lea.vmem %s26_s12, 512  ;;  %p174_p6 = scmp.lt.s32.totalorder %s26_s12, %s26_s12 }
   0xe   :  { %p170_p5 = scmp.ne.s32.totalorder %s26_s12, %s169_s16  ;;  %p175_p7 = scmp.lt.s32.totalorder %s169_s16, %s169_s16 }
  0x10   :  { %p176_p8 = por %p175_p7, %p174_p6 }
  0x12   :  { %p177_p9 = pnand %p176_p8, %p170_p5 }
  0x14   :  { %180 = shalt.err (!%p177_p9)
}
  0x15   :  { %s197_s17 = smov 256   ;;  %s198_s18 = smov 16  }
  0x16   :  { %31 = dma.hbm_to_vmem [thread:$0]  %s225_s1, 512, %s26_s12, [#allocation6], %s197_s17, %s197_s17, %s198_s18  }
  0x17   :  { %189 = dma.done.wait [#allocation3], 32  }
  0x18   :  { %190 = vsyncadd [#allocation3], 4294967264 }
  0x19   :  { %191 = dma.done.wait [#allocation6], 512  }
  0x1a   :  { %192 = vsyncadd [#allocation6], 4294966784  ;;  %v50_v0 = vlaneseq  ;;  %v46_v4 = vld [vmem:[#allocation5 + $0x10] sm:$0xff]  ;;  %v47_v5 = vld [vmem:[#allocation5 + $0x18] sm:$0xff]  ;;  %vm98_vm1 = vcmask 7168   ;;  %s199_s1 = smov [#allocation7]  }
  0x1b   :  { %v44_v6 = vld [vmem:[#allocation5] sm:$0xff]  ;;  %v72_v7 = vmul.f32 %v46_v4, %v46_v4  ;;  %v73_v8 = vmul.f32 %v47_v5, %v47_v5  ;;  %v45_v9 = vld [vmem:[#allocation5 + $0x8] sm:$0xff]  ;;  %v48_v11 = vld [vmem:[#allocation2] sm:$0x3] }
  0x1c   :  { %v51_v1 = vshrl.u32 %v50_v0, 7  ;;  %v70_v10 = vmul.f32 %v44_v6, %v44_v6  ;;  %v71_v12 = vmul.f32 %v45_v9, %v45_v9 }
  0x1d   :  { %v77_v15 = vadd.f32 %v73_v8, %v72_v7 }
  0x1e   :  { %v52_v2 = vsub.s32 0, %v51_v1  ;;  %v56_v3 = vsub.s32 1, %v51_v1  ;;  %v74_v19 = vadd.f32 %v71_v12, %v70_v10  ;;  %v89_v28 = vadd.s32 8, %v51_v1 }
  0x1f   :  { %78 = vadd.xlane.f32.xlu0 %v77_v15 }
  0x20   :  { %v53_v13 = vrot.slane %v48_v11, %v52_v2  ;;  %v57_v14 = vrot.slane %v48_v11, %v56_v3  ;;  %vm94_vm0 = vcmp.lt.s32.totalorder %v89_v28, 12 }
  0x22   :  { %v62_v16 = vmul.f32 %v53_v13, %v46_v4  ;;  %v63_v17 = vmul.f32 %v57_v14, %v47_v5  ;;  %v60_v18 = vmul.f32 %v53_v13, %v44_v6  ;;  %v61_v20 = vmul.f32 %v57_v14, %v45_v9 }
  0x23   :  { %75 = vadd.xlane.f32.xlu0 %v74_v19 }
  0x24   :  { %v67_v21 = vadd.f32 %v63_v17, %v62_v16  ;;  %v64_v22 = vadd.f32 %v61_v20, %v60_v18 }
  0x26   :  { %68 = vadd.xlane.f32.xlu1 %v67_v21 }
  0x2a   :  { %65 = vadd.xlane.f32.xlu1 %v64_v22 }
  0xa8   :  { %v79_v23 = vpop.xlane.xlu0 %78 }
  0xa9   :  { %v81_v24 = vmax.f32 %v79_v23, 1e-16 }
  0xab   :  { %137 = vrsqrt.f32 %v81_v24 }
  0xac   :  { %v76_v25 = vpop.xlane.xlu0 %75 }
  0xad   :  { %v80_v26 = vmax.f32 %v76_v25, 1e-16 }
  0xaf   :  { %139 = vrsqrt.f32 %v80_v26  ;;  %v69_v27 = vpop.xlane.xlu1 %68 }
  0xb3   :  { %v66_v31 = vpop.xlane.xlu1 %65 }
  0xb8   :  { %v138_v29 = vpop.eup %137 }
  0xb9   :  { %v85_v30 = vmul.f32 %v138_v29, %v69_v27 }
  0xbb   :  { %v96_v33 = vsel %vm94_vm0, %v85_v30, 0.0 }
  0xbc   :  { %v140_v32 = vpop.eup %139  ;;  %v100_v36 = vsel %vm98_vm1, %v96_v33, 0.0 }
  0xbd   :  { %v84_v34 = vmul.f32 %v140_v32, %v66_v31 }
  0xbf   :  { %v99_v35 = vsel %vm98_vm1, %v84_v34, 0.0 }
  0xc0   :  { %v101_v37 = vadd.f32 %v100_v36, %v99_v35 }
  0xc2   :  { %102 = vadd.xlane.f32.xlu0 %v101_v37 }
 0x14b   :  { %v103_v38 = vpop.xlane.xlu0 %102 }
 0x14c   :  { %v104_v39 = vrot.slane %v103_v38, 4 }
 0x14e   :  { %v105_v40 = vadd.f32 %v104_v39, %v103_v38 }
 0x150   :  { %v106_v41 = vrot.slane %v105_v40, 2 }
 0x152   :  { %v107_v42 = vadd.f32 %v106_v41, %v105_v40 }
 0x154   :  { %v108_v43 = vrot.slane %v107_v42, 1 }
 0x156   :  { %v109_v44 = vadd.f32 %v108_v43, %v107_v42 }
 0x158   :  { %129 = vpush %v109_v44 }
 0x189   :  { %s130_s0 = spop %129 }
 0x18a   :  { %113 = sst [smem:[#allocation7]] %s130_s0 }
 0x18b   :  { %121 = dma.smem_to_hbm %s199_s1, 16, %s226_s2, [#allocation4]  }
 0x18c   :  { %193 = dma.done.wait [#allocation4], 16  }
 0x18d   :  { %194 = vsyncadd [#allocation4], 4294967280 }
 0x18e   :  { %125 = sfence }
 0x18f   :  { %126 = vsyncpa [#allocation3], 1 }
 0x190   :  { %127 = vsyncpa [#allocation6], 1 }
 0x191   :  { %128 = vsyncpa [#allocation4], 1 }

</bundles_post_ra>
